<compile_context>
chip_gen: v5e
topology: v5e:2x2
jax: 0.10.0
libtpu: 0.0.40
codegen_flags: <defaults>
</compile_context>

<pallas_src>
import functools

import jax
import jax.numpy as jnp
from jax import lax
from jax.experimental import pallas as pl
from jax.experimental.pallas import tpu as pltpu


# ---------------------------------------------------------------------------
# Helpers
# ---------------------------------------------------------------------------
def _round_up(x: int, m: int) -> int:
    return ((x + m - 1) // m) * m


def _fit_tile(dim: int, target: int, align: int) -> int:
    """Largest tile <= target that divides dim and is a multiple of align."""
    assert dim % align == 0, (dim, align)
    if dim <= target:
        return dim
    t = (target // align) * align
    while t > align and dim % t != 0:
        t -= align
    return t


# ---------------------------------------------------------------------------
# Kernel 1: tiled  out[M, N] = x[M, K] @ w[K, N] + b[N]
#   bias folded into the accumulator init at k == 0.
# ---------------------------------------------------------------------------
def _matmul_bias_kernel(x_ref, w_ref, b_ref, o_ref, acc_ref):
    @pl.when(pl.program_id(2) == 0)
    def _():
        acc_ref[...] = jnp.broadcast_to(
            b_ref[...].astype(jnp.float32), acc_ref.shape)

    # Operands stay in their input dtype (bf16-friendly); accumulate in f32.
    acc_ref[...] += jnp.dot(x_ref[...], w_ref[...],
                            preferred_element_type=jnp.float32)

    @pl.when(pl.program_id(2) == pl.num_programs(2) - 1)
    def _():
        o_ref[...] = acc_ref[...].astype(o_ref.dtype)


def matmul_bias(x, w, b, *, tm=256, tn=256, tk=512):
    M, K = x.shape
    K2, N = w.shape
    assert K == K2 and b.shape == (N,)

    tm = _fit_tile(M, tm, 128)
    tn = _fit_tile(N, tn, 128)
    tk = _fit_tile(K, tk, 128)
    b2 = b.reshape(1, N)

    grid = (M // tm, N // tn, K // tk)
    return pl.pallas_call(
        _matmul_bias_kernel,
        out_shape=jax.ShapeDtypeStruct((M, N), x.dtype),
        grid_spec=pltpu.PrefetchScalarGridSpec(
            num_scalar_prefetch=0,
            grid=grid,
            in_specs=[
                pl.BlockSpec((tm, tk), lambda i, j, k: (i, k)),
                pl.BlockSpec((tk, tn), lambda i, j, k: (k, j)),
                pl.BlockSpec((1, tn), lambda i, j, k: (0, j)),
            ],
            out_specs=pl.BlockSpec((tm, tn), lambda i, j, k: (i, j)),
            scratch_shapes=[pltpu.VMEM((tm, tn), jnp.float32)],
        ),
        compiler_params=pltpu.CompilerParams(
            dimension_semantics=("parallel", "parallel", "arbitrary"),
            vmem_limit_bytes=48 * 1024 * 1024),
    )(x, w, b2)


# ---------------------------------------------------------------------------
# Kernel 2: flash-style causal attention, fused head layout.
#   qkv : [S, 3E]  (q = cols [0,E), k = [E,2E), v = [2E,3E))
#   out : [S, E]   (lane-dense)
# Per-head (tq, D) / (tk, D) windows are static lane slices of the (tq, E) /
# (tk, E) VMEM tiles, so no [S,E]<->[H,S,D] HBM transposes are needed.
# ---------------------------------------------------------------------------
def _flash_attn_kernel(q_ref, k_ref, v_ref, o_ref, m_ref, l_ref, acc_ref, *,
                       scaling, tq, tk, num_heads, head_dim):
    H, D = num_heads, head_dim
    qi = pl.program_id(0)
    ki = pl.program_id(1)
    q_start = qi * tq
    k_start = ki * tk

    @pl.when(ki == 0)
    def _():
        m_ref[...] = jnp.full_like(m_ref, -1e30)
        l_ref[...] = jnp.zeros_like(l_ref)
        acc_ref[...] = jnp.zeros_like(acc_ref)

    def attend(apply_mask):
        if apply_mask:
            # Additive causal mask, built once per tile and shared by all heads.
            rows = q_start + lax.broadcasted_iota(jnp.int32, (tq, tk), 0)
            cols = k_start + lax.broadcasted_iota(jnp.int32, (tq, tk), 1)
            neg = jnp.where(cols <= rows, jnp.float32(0.0), jnp.float32(-1e30))
        # Unrolled per-head loop: each head is a (tq,D)x(D,tk) NT matmul on
        # the MXU plus an online-softmax update with f32 statistics.
        for h in range(H):
            lo, hi = h * D, (h + 1) * D
            q_h = q_ref[:, lo:hi]
            k_h = k_ref[:, lo:hi]
            v_h = v_ref[:, lo:hi]
            s = lax.dot_general(q_h, k_h, (((1,), (1,)), ((), ())),
                                preferred_element_type=jnp.float32)
            s = s * jnp.float32(scaling)
            if apply_mask:
                s = s + neg
            m_prev = m_ref[h]                                   # (tq, 1)
            m_new = jnp.maximum(m_prev, s.max(axis=-1, keepdims=True))
            alpha = jnp.exp(m_prev - m_new)
            p = jnp.exp(s - m_new)
            l_ref[h] = alpha * l_ref[h] + p.sum(axis=-1, keepdims=True)
            acc_ref[h] = alpha * acc_ref[h] + jnp.dot(
                p.astype(v_h.dtype), v_h, preferred_element_type=jnp.float32)
            m_ref[h] = m_new

    # Tile classification w.r.t. the causal diagonal.
    fully_below = (k_start + (tk - 1)) <= q_start            # no mask needed
    straddles = jnp.logical_and((k_start + (tk - 1)) > q_start,
                                k_start <= (q_start + (tq - 1)))
    # (Tiles fully above the diagonal fall through: no compute, and the
    #  clamped K/V index_map means no DMA was issued for them either.)

    @pl.when(fully_below)
    def _():
        attend(False)

    @pl.when(straddles)
    def _():
        attend(True)

    @pl.when(ki == pl.num_programs(1) - 1)
    def _():
        for h in range(H):
            inv_l = pl.reciprocal(l_ref[h], approx=True)
            o_ref[:, h * D:(h + 1) * D] = (acc_ref[h] * inv_l).astype(o_ref.dtype)


def flash_attention_fused(qkv, *, num_heads, scaling, tq=128, tk=128):
    S, three_e = qkv.shape
    E = three_e // 3
    assert three_e == 3 * E
    D = E // num_heads
    assert num_heads * D == E
    assert S % tq == 0 and S % tk == 0, "caller pads S to a multiple of 128"

    grid = (S // tq, S // tk)

    def kv_index(qi, ki, col):
        # Clamp the kv row-block index at the causal-diagonal limit so blocks
        # fully above the diagonal repeat the previous index (no DMA).
        limit = (qi * tq + (tq - 1)) // tk
        return (jnp.minimum(ki, limit), col)

    kernel = functools.partial(_flash_attn_kernel, scaling=scaling, tq=tq,
                               tk=tk, num_heads=num_heads, head_dim=D)
    return pl.pallas_call(
        kernel,
        out_shape=jax.ShapeDtypeStruct((S, E), qkv.dtype),
        grid_spec=pltpu.PrefetchScalarGridSpec(
            num_scalar_prefetch=0,
            grid=grid,
            in_specs=[
                pl.BlockSpec((tq, E), lambda qi, ki: (qi, 0)),           # Q
                pl.BlockSpec((tk, E), lambda qi, ki: kv_index(qi, ki, 1)),  # K
                pl.BlockSpec((tk, E), lambda qi, ki: kv_index(qi, ki, 2)),  # V
            ],
            out_specs=pl.BlockSpec((tq, E), lambda qi, ki: (qi, 0)),
            scratch_shapes=[
                pltpu.VMEM((num_heads, tq, 1), jnp.float32),   # running max
                pltpu.VMEM((num_heads, tq, 1), jnp.float32),   # running sum
                pltpu.VMEM((num_heads, tq, D), jnp.float32),   # output acc
            ],
        ),
        compiler_params=pltpu.CompilerParams(
            dimension_semantics=("parallel", "arbitrary"),
            vmem_limit_bytes=48 * 1024 * 1024),
    )(qkv, qkv, qkv)


# ---------------------------------------------------------------------------
# OPTAttention.forward (causal prefill, no KV cache, no LoRA)
# ---------------------------------------------------------------------------
def opt_attention(hidden_states, w_qkv, b_qkv, w_out, b_out, *, num_heads,
                  compute_dtype=jnp.bfloat16):
    """hidden_states: [S, E]; w_qkv: [E, 3E]; b_qkv: [3E]; w_out: [E, E]; b_out: [E]."""
    S, E = hidden_states.shape
    assert E % 128 == 0, "embed_dim must be a multiple of 128"
    head_dim = E // num_heads
    assert num_heads * head_dim == E
    scaling = float(head_dim) ** -0.5
    out_dtype = hidden_states.dtype

    # bf16 operands for all matmuls / attention (f32 accumulation in-kernel).
    x = hidden_states.astype(compute_dtype)
    w_qkv_c = w_qkv.astype(compute_dtype)
    w_out_c = w_out.astype(compute_dtype)

    # Pad the token dim to a multiple of 128; causal masking makes the padded
    # key rows unreachable from real query rows, padded outputs are sliced off.
    s_pad = _round_up(S, 128)
    if s_pad != S:
        x = jnp.pad(x, ((0, s_pad - S), (0, 0)))

    # Fused QKV projection (bias folded into the f32 accumulator init).
    qkv = matmul_bias(x, w_qkv_c, b_qkv)                      # [S_pad, 3E]

    # Flash attention reads per-head windows straight from qkv and writes a
    # lane-dense [S_pad, E] — no XLA-side split / head transpose round trips.
    attn = flash_attention_fused(qkv, num_heads=num_heads, scaling=scaling)

    # Output projection.
    out = matmul_bias(attn, w_out_c, b_out)                   # [S_pad, E]
    if s_pad != S:
        out = out[:S]
    return out.astype(out_dtype)


# ---------------------------------------------------------------------------
# Pure-JAX reference (causal prefill attention, f32 math).
# ---------------------------------------------------------------------------
def _reference(hidden_states, w_qkv, b_qkv, w_out, b_out, *, num_heads):
    S, E = hidden_states.shape
    D = E // num_heads
    scaling = float(D) ** -0.5
    h = hidden_states.astype(jnp.float32)
    qkv = h @ w_qkv.astype(jnp.float32) + b_qkv.astype(jnp.float32)
    q, k, v = jnp.split(qkv, 3, axis=-1)
    q = q.reshape(S, num_heads, D).transpose(1, 0, 2) * scaling
    k = k.reshape(S, num_heads, D).transpose(1, 0, 2)
    v = v.reshape(S, num_heads, D).transpose(1, 0, 2)
    scores = jnp.einsum("hqd,hkd->hqk", q, k)
    mask = jnp.tril(jnp.ones((S, S), dtype=bool))
    scores = jnp.where(mask[None], scores, -jnp.inf)
    p = jax.nn.softmax(scores, axis=-1)
    attn = jnp.einsum("hqk,hkd->hqd", p, v).transpose(1, 0, 2).reshape(S, E)
    return attn @ w_out.astype(jnp.float32) + b_out.astype(jnp.float32)


if __name__ == "__main__":
    # Small shapes consistent with OPTAttention: embed_dim=256, num_heads=4
    # (head_dim=64), num_tokens(seq)=256 — exercises the matmul tiling, the
    # 2x2 flash-attention grid, the causal-DMA clamp and the fused layouts.
    embed_dim = 256
    num_heads = 4
    seq = 256

    key = jax.random.PRNGKey(0)
    k0, k1, k2, k3, k4 = jax.random.split(key, 5)

    # bf16 parameters/activations (serving dtype); reference runs them in f32.
    hidden_states = jax.random.normal(
        k0, (seq, embed_dim), jnp.float32).astype(jnp.bfloat16)
    # nn.Linear(E, 3E): weight [3E, E]; stored transposed [E, 3E].
    w_qkv = (jax.random.normal(k1, (embed_dim, 3 * embed_dim), jnp.float32)
             * 0.05).astype(jnp.bfloat16)
    b_qkv = (jax.random.normal(k2, (3 * embed_dim,), jnp.float32)
             * 0.05).astype(jnp.bfloat16)
    # nn.Linear(E, E): weight [E, E]; stored transposed [E, E].
    w_out = (jax.random.normal(k3, (embed_dim, embed_dim), jnp.float32)
             * 0.05).astype(jnp.bfloat16)
    b_out = (jax.random.normal(k4, (embed_dim,), jnp.float32)
             * 0.05).astype(jnp.bfloat16)

    out = opt_attention(hidden_states, w_qkv, b_qkv, w_out, b_out,
                        num_heads=num_heads)
    out = jax.block_until_ready(out)

    ref = _reference(hidden_states, w_qkv, b_qkv, w_out, b_out,
                     num_heads=num_heads)
    assert out.shape == (seq, embed_dim)
    # Tolerance covers bf16 operands / bf16 intermediates and the approximate
    # (EUP) reciprocal in the softmax normalization.
    max_err = float(jnp.max(jnp.abs(out.astype(jnp.float32) - ref)))
    assert jnp.allclose(out.astype(jnp.float32), ref,
                        atol=3e-2, rtol=3e-2), max_err

    print("KERNEL_OK")
</pallas_src>

<mosaic_0001>
module attributes {stable_mosaic.version = 11 : i64} {
  func.func @_matmul_bias_kernel(%arg0: i32, %arg1: i32, %arg2: i32, %arg3: memref<256x256xbf16, #tpu.memory_space<vmem>>, %arg4: memref<256x256xbf16, #tpu.memory_space<vmem>>, %arg5: memref<1x256xbf16, #tpu.memory_space<vmem>>, %arg6: memref<256x256xbf16, #tpu.memory_space<vmem>>, %arg7: memref<256x256xf32, #tpu.memory_space<vmem>>) attributes {dimension_semantics = [#tpu.dimension_semantics<parallel>, #tpu.dimension_semantics<parallel>, #tpu.dimension_semantics<arbitrary>], iteration_bounds = array<i64: 1, 3, 1>, scalar_prefetch = 0 : i64, scratch_operands = 1 : i64, tpu.core_type = #tpu.core_type<tc>, window_params = [{transform_indices = @transform_0, window_bounds = array<i64: 256, 256>}, {transform_indices = @transform_1, window_bounds = array<i64: 256, 256>}, {transform_indices = @transform_2, window_bounds = array<i64: 1, 256>}, {transform_indices = @transform_3, window_bounds = array<i64: 256, 256>}]} {
    %c0_i32 = arith.constant 0 : i32
    %0 = arith.cmpi eq, %arg2, %c0_i32 : i32
    %1 = arith.extui %0 : i1 to i32
    %c0_i32_0 = arith.constant 0 : i32
    %2 = arith.cmpi ne, %1, %c0_i32_0 : i32
    scf.if %2 {
      %c0_10 = arith.constant 0 : index
      %c0_11 = arith.constant 0 : index
      %12 = vector.load %arg5[%c0_10, %c0_11] : memref<1x256xbf16, #tpu.memory_space<vmem>>, vector<1x256xbf16>
      %13 = arith.extf %12 : vector<1x256xbf16> to vector<1x256xf32>
      %14 = vector.shape_cast %13 : vector<1x256xf32> to vector<1x256xf32>
      %15 = vector.broadcast %14 : vector<1x256xf32> to vector<256x256xf32>
      %c0_12 = arith.constant 0 : index
      %c0_13 = arith.constant 0 : index
      %16 = vector.load %arg7[%c0_12, %c0_13] : memref<256x256xf32, #tpu.memory_space<vmem>>, vector<256x256xf32>
      tpu.vector_store %arg7[%c0_12, %c0_13], %15 {strides = array<i32>} : memref<256x256xf32, #tpu.memory_space<vmem>>, vector<256x256xf32>,
    } else {
    }
    %c0 = arith.constant 0 : index
    %c0_1 = arith.constant 0 : index
    %3 = vector.load %arg7[%c0, %c0_1] : memref<256x256xf32, #tpu.memory_space<vmem>>, vector<256x256xf32>
    %c0_2 = arith.constant 0 : index
    %c0_3 = arith.constant 0 : index
    %4 = vector.load %arg3[%c0_2, %c0_3] : memref<256x256xbf16, #tpu.memory_space<vmem>>, vector<256x256xbf16>
    %c0_4 = arith.constant 0 : index
    %c0_5 = arith.constant 0 : index
    %5 = vector.load %arg4[%c0_4, %c0_5] : memref<256x256xbf16, #tpu.memory_space<vmem>>, vector<256x256xbf16>
    %cst = arith.constant dense<0.000000e+00> : vector<256x256xf32>
    %6 = tpu.matmul %4, %5, %cst {dimension_numbers = #tpu.dot_dimension_numbers<[1], [0], [0], [1], [0, 0, 1, 1], [], []>} : vector<256x256xbf16>, vector<256x256xbf16>, vector<256x256xf32> -> vector<256x256xf32>
    %7 = arith.addf %3, %6 : vector<256x256xf32>
    %c0_6 = arith.constant 0 : index
    %c0_7 = arith.constant 0 : index
    %8 = vector.load %arg7[%c0_6, %c0_7] : memref<256x256xf32, #tpu.memory_space<vmem>>, vector<256x256xf32>
    tpu.vector_store %arg7[%c0_6, %c0_7], %7 {strides = array<i32>} : memref<256x256xf32, #tpu.memory_space<vmem>>, vector<256x256xf32>,
    %c0_i32_8 = arith.constant 0 : i32
    %9 = arith.cmpi eq, %arg2, %c0_i32_8 : i32
    %10 = arith.extui %9 : i1 to i32
    %c0_i32_9 = arith.constant 0 : i32
    %11 = arith.cmpi ne, %10, %c0_i32_9 : i32
    scf.if %11 {
      %c0_10 = arith.constant 0 : index
      %c0_11 = arith.constant 0 : index
      %12 = vector.load %arg7[%c0_10, %c0_11] : memref<256x256xf32, #tpu.memory_space<vmem>>, vector<256x256xf32>
      %13 = arith.truncf %12 : vector<256x256xf32> to vector<256x256xbf16>
      %c0_12 = arith.constant 0 : index
      %c0_13 = arith.constant 0 : index
      %14 = vector.load %arg6[%c0_12, %c0_13] : memref<256x256xbf16, #tpu.memory_space<vmem>>, vector<256x256xbf16>
      tpu.vector_store %arg6[%c0_12, %c0_13], %13 {strides = array<i32>} : memref<256x256xbf16, #tpu.memory_space<vmem>>, vector<256x256xbf16>,
    } else {
    }
    return
  }
  func.func @transform_0(%arg0: i32, %arg1: i32, %arg2: i32) -> (i32, i32) {
    %c0_i32 = arith.constant 0 : i32
    return %arg0, %arg2 : i32, i32
  }
  func.func @transform_1(%arg0: i32, %arg1: i32, %arg2: i32) -> (i32, i32) {
    %c0_i32 = arith.constant 0 : i32
    return %arg2, %arg1 : i32, i32
  }
  func.func @transform_2(%arg0: i32, %arg1: i32, %arg2: i32) -> (i32, i32) {
    %c0_i32 = arith.constant 0 : i32
    %c0_i32_0 = arith.constant 0 : i32
    return %c0_i32, %arg1 : i32, i32
  }
  func.func @transform_3(%arg0: i32, %arg1: i32, %arg2: i32) -> (i32, i32) {
    %c0_i32 = arith.constant 0 : i32
    return %arg0, %arg1 : i32, i32
  }
}

</mosaic_0001>

<bundles_post_ra>
// kernel: tpu_custom_call.1
= control target key start
LH: loop header
LB: loop body
LE: loop exit
PB: predicated region body
PF: predicated region fallthrough
CT: control target
= control target key end

     0   :  { %s2554_s0 = inlined_call_operand.hbm [shape: bf16[256,256], index: 0, kind: input, shape index: {}]   ;;  %s2555_s1 = inlined_call_operand.hbm [shape: bf16[256,768], index: 1, kind: input, shape index: {}]   ;;  %s2556_s2 = inlined_call_operand.hbm [shape: bf16[1,768], index: 2, kind: input, shape index: {}]   ;;  %s2557_s3 = inlined_call_operand.hbm [shape: bf16[256,768], index: 3, kind: output, shape index: {}]  }
   0x1   :  { %2560 = sst [smem:[#allocation13_spill]] %s2554_s0 }
   0x2   :  { %2561 = sst [smem:[#allocation14_spill]] %s2555_s1 }
   0x3   :  { %8 = vsyncpa [#allocation4], 0 }
   0x4   :  { %9 = vsyncpa [#allocation7], 0 }
   0x5   :  { %11 = vsyncpa [#allocation7 + $0x1], 0 }
   0x6   :  { %12 = vsyncpa [#allocation5], 0 }
   0x7   :  { %14 = vsyncpa [#allocation5 + $0x1], 0  ;;  %s2207_s12 = smov 0   ;;  %s2209_s13 = smov 0  }
   0x8   :  { %s2211_s14 = smov 0   ;;  %s2213_s15 = smov 0  }
   0x9   :  { %s2215_s16 = smov 0   ;;  %s2217_s17 = smov 0  }
   0xa LB: > { %s35_s18 = sadd.s32 1, %s2174_s16  ;;  %s76_s19 = sadd.s32 1, %s2166_s14  ;;  %s2178_s17 = sphi %s2217_s17, %s20_s17   ;;  %s2174_s16 = sphi %s2215_s16, %s2576_s16   ;;  %s2170_s15 = sphi %s2213_s15, %s2575_s15   ;;  %s2166_s14 = sphi %s2211_s14, %s2574_s14   ;;  %s2162_s13 = sphi %s2209_s13, %s2573_s13   ;;  %s2158_s12 = sphi %s2207_s12, %s2572_s12  }
   0xb   : > { %p37_p0 = scmp.ge.s32.totalorder %s35_s18, 3  ;;  %p83_p1 = scmp.ne.s32.totalorder %s2166_s14, %s2162_s13 }
   0xc   : > { %p84_p2 = scmp.eq.s32.totalorder %s2178_s17, 0  ;;  %p1944_p5 = scmp.lt.s32.totalorder %s2178_s17, 3 }
   0xd   : > { %s2578_s18 = smov (%p37_p0, %s35_s18), 0  ;;  %s187_s22 = sand.u32 1, %s2178_s17  }
   0xe   : > { %p2247_p3 = por %p84_p2, %p83_p1  ;;  %s72_s21 = ssub.s32 %s2174_s16, %s2578_s18 }
   0xf   : > { %p74_p4 = scmp.eq.s32.totalorder %s72_s21, 0  ;;  %s189_s23 = sand.u32 1, %s2166_s14  }
  0x10   : > { %s1581_s25 = sshll.u32 %s189_s23, 8  ;;  %s1852_s26 = sshll.u32 %s2174_s16, 3 }
  0x11   : > { %s2257_s24 = scalar_select %p74_p4, %s2166_s14, %s76_s19  }
  0x12   : > { %s2563_s1 = sld [smem:[#allocation14_spill]]  ;;  %s191_s30 = scalar_lea.vmem [#allocation6], %s1581_s25 }
  0x13   : > { %s202_s4 = sshll.u32 %s191_s30, 4  ;;  %p2267_p6 = pnand %p1944_p5, %p2247_p3  ;;  %s203_s4 = int_to_ptr.vmem [resolvable:$true] %s202_s4 }
  0x14   : > { %s2271_s7 = scalar_lea.sflag [#allocation7], %s187_s22  ;;  %s2180_s8 = smov 384  }
  0x15   : > { %s2558_s9 = smov 128   ;;  %s2559_s10 = smov 8  }
  0x16   : > { %s2279_s11 = sadd.s32 4294967295, %s2178_s17   ;;  %s1577_s19 = sadd.s32 4294967294, %s2178_s17  }
  0x17   : > { %p89_p7 = scmp.ne.s32.totalorder %s2162_s13, %s2158_s12  ;;  %p90_p8 = scmp.eq.s32.totalorder %s2279_s11, 0 }
  0x18   : > { %s199_s29 = scalar_lea.hbm %s2563_s1, %s1852_s26  ;;  %p141_p9 = scmp.eq.s32.totalorder %s2279_s11, 2 }
  0x19   : > { %s200_s5 = sshll.u32 %s199_s29, 4  ;;  %p147_p10 = scmp.eq.s32.totalorder %s1577_s19, 2  ;;  %s201_s5 = int_to_ptr.hbm [resolvable:$true] %s200_s5 }
  0x1a   : > { %1935 = dma.hbm_to_vmem [thread:$0]  (!%p2267_p6), %s201_s5, 4096, %s203_s4, %s2271_s7, %s2180_s8, %s2558_s9, %s2559_s10  }
  0x1b   : > { %p2288_p11 = por %p90_p8, %p89_p7  ;;  %p1578_p12 = scmp.ge.s32.totalorder %s2178_s17, 1 }
  0x1c   : > { %p2296_p13 = por %p141_p9, %p83_p1  ;;  %p2300_p0 = por %p147_p10, %p89_p7 }
  0x1d   : > { %p154_p2 = scmp.lt.s32.totalorder %s2178_s17, 4  ;;  %s2568_s0 = sld [smem:[#allocation13_spill]] }
  0x1e   : > { %s2183_s29 = smov [#allocation3]   ;;  %s1584_s4 = sshll.u32 %s189_s23, 1 }
  0x1f   : > { %p2308_p3 = pnand %p1578_p12, %p154_p2  ;;  %s173_s30 = sshll.u32 %s2183_s29, 4  ;;  %s174_s30 = int_to_ptr.vmem [resolvable:$true] %s173_s30 }
  0x20   : > { %s1585_s5 = sshll.u32 %s2174_s16, 1  ;;  %s216_s9 = scalar_lea.vmem [#allocation8], %s1584_s4 }
  0x21   : > { %p1928_p1 = pneg %p2308_p3  ;;  %s220_s25 = scalar_lea.hbm %s2556_s2, %s1585_s5 }
  0x22   : > { %s222_s26 = sshll.u32 %s220_s25, 4  ;;  %s224_s10 = sshll.u32 %s216_s9, 4  ;;  %s223_s26 = int_to_ptr.hbm [resolvable:$true] %s222_s26  ;;  %s225_s10 = int_to_ptr.vmem [resolvable:$true] %s224_s10 }
  0x23   : > { %s171_s27 = sshll.u32 %s2568_s0, 4  ;;  %p1929_p4 = pnand %p1928_p1, %p90_p8  ;;  %s172_s27 = int_to_ptr.hbm [resolvable:$true] %s171_s27 }
  0x24   : > { %s2570_s0 = smov 8   ;;  %s2571_s1 = smov 128  }
  0x25   : > { %1931 = dma.hbm_to_vmem [thread:$0]  (!%p1929_p4), %s172_s27, 4096, %s174_s30, [#allocation4], %s2571_s1, %s2571_s1, %s2570_s0  }
  0x26   : > { %1938 = dma.hbm_to_vmem [thread:$0]  (!%p2267_p6), %s223_s26, 32, %s225_s10, %s2271_s7  }
  0x27   : > { %233 = sbr.rel (%p2308_p3) target bundleno = 477 (0x1dd), region = 32 }
  0x2c   : > { %2145 = dma.done.wait (%p90_p8), [#allocation4], 4096  }
  0x2d   : > { %2147 = vsyncadd (%p90_p8), [#allocation4], 4294963200  ;;  %s240_s23 = sand.u32 1, %s2279_s11   ;;  %s2336_s9 = sand.u32 1, %s2162_s13  }
  0x2e   : > { %s1588_s0 = sshll.u32 %s2336_s9, 8  ;;  %s241_s1 = scalar_lea.sflag [#allocation7], %s240_s23 }
  0x2f   : > { %s2341_s6 = scalar_lea.vmem [#allocation6], %s1588_s0 }
  0x30   : > { %2149 = dma.done.wait (%p2288_p11), %s241_s1, 4128  }
  0x31   : > { %2151 = vsyncadd (%p2288_p11), %s241_s1, 4294963168  ;;  %v1777_v0 = vld [vmem:[%s2341_s6 + $0x70] sm:$0xf]  ;;  %v1900_v1 = vld [vmem:[%s2341_s6 + $0x74] sm:$0xf0]  ;;  %s1589_s7 = sshll.u32 %s2336_s9, 1 }
  0x32   : > { %v1841_v2 = vld [vmem:[%s2341_s6 + $0xf0] sm:$0xf]  ;;  %v1778_v3 = vor.u32 %v1900_v1, %v1777_v0  ;;  %v1916_v4 = vld [vmem:[%s2341_s6 + $0xf4] sm:$0xf0]  ;;  %v1899_v5 = vld [vmem:[%s2341_s6 + $0x74] sm:$0xf] }
  0x33   : > { %v1779_v6 = vld [vmem:[%s2341_s6 + $0x78] sm:$0xf0]  ;;  %v1842_v7 = vor.u32 %v1916_v4, %v1841_v2  ;;  %v1915_v9 = vld [vmem:[%s2341_s6 + $0xf4] sm:$0xf]  ;;  %v1769_v11 = vld [vmem:[%s2341_s6 + $0x60] sm:$0xf] }
  0x34   : > { %v1782_v8 = vor.u32 %v1899_v5, %v1779_v6  ;;  %v1843_v10 = vld [vmem:[%s2341_s6 + $0xf8] sm:$0xf0]  ;;  %815 = vmatpush.bf16.msra.mxu0 %v1778_v3  ;;  %v1898_v13 = vld [vmem:[%s2341_s6 + $0x64] sm:$0xf0]  ;;  %v1833_v14 = vld [vmem:[%s2341_s6 + $0xe0] sm:$0xf] }
  0x35   : > { %v1846_v12 = vor.u32 %v1915_v9, %v1843_v10  ;;  %v1914_v15 = vld [vmem:[%s2341_s6 + $0xe4] sm:$0xf0]  ;;  %904 = vmatpush.bf16.msra.mxu1 %v1842_v7  ;;  %v1770_v16 = vor.u32 %v1898_v13, %v1769_v11  ;;  %v1897_v18 = vld [vmem:[%s2341_s6 + $0x64] sm:$0xf]  ;;  %v1771_v19 = vld [vmem:[%s2341_s6 + $0x68] sm:$0xf0] }
  0x36   : > { %993 = vmatpush.bf16.msra.mxu2 %v1782_v8  ;;  %v1834_v17 = vor.u32 %v1914_v15, %v1833_v14  ;;  %v1913_v20 = vld [vmem:[%s2341_s6 + $0xe4] sm:$0xf]  ;;  %v1774_v21 = vor.u32 %v1897_v18, %v1771_v19  ;;  %v1835_v22 = vld [vmem:[%s2341_s6 + $0xe8] sm:$0xf0]  ;;  %v1761_v23 = vld [vmem:[%s2341_s6 + $0x50] sm:$0xf] }
  0x37   : > { %1082 = vmatpush.bf16.msra.mxu3 %v1846_v12  ;;  %v1896_v24 = vld [vmem:[%s2341_s6 + $0x54] sm:$0xf0]  ;;  %v1838_v25 = vor.u32 %v1913_v20, %v1835_v22  ;;  %v1825_v26 = vld [vmem:[%s2341_s6 + $0xd0] sm:$0xf]  ;;  %v1895_v28 = vld [vmem:[%s2341_s6 + $0x54] sm:$0xf] }
  0x38   : > { %v1912_v27 = vld [vmem:[%s2341_s6 + $0xd4] sm:$0xf0]  ;;  %816 = vmatpush.bf16.msra.mxu0 %v1770_v16  ;;  %v1762_v29 = vor.u32 %v1896_v24, %v1761_v23  ;;  %v1763_v30 = vld [vmem:[%s2341_s6 + $0x58] sm:$0xf0]  ;;  %v1911_v31 = vld [vmem:[%s2341_s6 + $0xd4] sm:$0xf] }
  0x39   : > { %v1827_v32 = vld [vmem:[%s2341_s6 + $0xd8] sm:$0xf0]  ;;  %905 = vmatpush.bf16.msra.mxu1 %v1834_v17  ;;  %v1826_v33 = vor.u32 %v1912_v27, %v1825_v26  ;;  %v1766_v34 = vor.u32 %v1895_v28, %v1763_v30  ;;  %v1753_v35 = vld [vmem:[%s2341_s6 + $0x40] sm:$0xf]  ;;  %v1894_v36 = vld [vmem:[%s2341_s6 + $0x44] sm:$0xf0] }
  0x3a   : > { %994 = vmatpush.bf16.msra.mxu2 %v1774_v21  ;;  %v1817_v37 = vld [vmem:[%s2341_s6 + $0xc0] sm:$0xf]  ;;  %v1830_v38 = vor.u32 %v1911_v31, %v1827_v32  ;;  %v1910_v39 = vld [vmem:[%s2341_s6 + $0xc4] sm:$0xf0]  ;;  %v1893_v40 = vld [vmem:[%s2341_s6 + $0x44] sm:$0xf]  ;;  %v1754_v44 = vor.u32 %v1894_v36, %v1753_v35 }
  0x3b   : > { %1083 = vmatpush.bf16.msra.mxu3 %v1838_v25  ;;  %v1755_v41 = vld [vmem:[%s2341_s6 + $0x48] sm:$0xf0]  ;;  %v1909_v42 = vld [vmem:[%s2341_s6 + $0xc4] sm:$0xf]  ;;  %v1818_v45 = vor.u32 %v1910_v39, %v1817_v37  ;;  %v1745_v47 = vld [vmem:[%s2341_s6 + $0x30] sm:$0xf] }
  0x3c   : > { %v1819_v43 = vld [vmem:[%s2341_s6 + $0xc8] sm:$0xf0]  ;;  %817 = vmatpush.bf16.msra.mxu0 %v1762_v29  ;;  %v1758_v46 = vor.u32 %v1893_v40, %v1755_v41  ;;  %v1892_v48 = vld [vmem:[%s2341_s6 + $0x34] sm:$0xf0]  ;;  %v1809_v49 = vld [vmem:[%s2341_s6 + $0xb0] sm:$0xf] }
  0x3d   : > { %906 = vmatpush.bf16.msra.mxu1 %v1826_v33  ;;  %v1822_v50 = vor.u32 %v1909_v42, %v1819_v43  ;;  %v1908_v51 = vld [vmem:[%s2341_s6 + $0xb4] sm:$0xf0]  ;;  %v1891_v52 = vld [vmem:[%s2341_s6 + $0x34] sm:$0xf]  ;;  %v1747_v53 = vld [vmem:[%s2341_s6 + $0x38] sm:$0xf0]  ;;  %v1746_v56 = vor.u32 %v1892_v48, %v1745_v47 }
  0x3e   : > { %995 = vmatpush.bf16.msra.mxu2 %v1766_v34  ;;  %v1907_v54 = vld [vmem:[%s2341_s6 + $0xb4] sm:$0xf]  ;;  %v1811_v55 = vld [vmem:[%s2341_s6 + $0xb8] sm:$0xf0]  ;;  %v1810_v57 = vor.u32 %v1908_v51, %v1809_v49  ;;  %v1750_v58 = vor.u32 %v1891_v52, %v1747_v53  ;;  %v1737_v59 = vld [vmem:[%s2341_s6 + $0x20] sm:$0xf] }
  0x3f   : > { %1084 = vmatpush.bf16.msra.mxu3 %v1830_v38  ;;  %v1890_v60 = vld [vmem:[%s2341_s6 + $0x24] sm:$0xf0]  ;;  %v1801_v61 = vld [vmem:[%s2341_s6 + $0xa0] sm:$0xf]  ;;  %v1814_v62 = vor.u32 %v1907_v54, %v1811_v55  ;;  %v1889_v0 = vld [vmem:[%s2341_s6 + $0x24] sm:$0xf] }
  0x40   : > { %818 = vmatpush.bf16.msra.mxu0 %v1754_v44  ;;  %v1906_v63 = vld [vmem:[%s2341_s6 + $0xa4] sm:$0xf0]  ;;  %v1739_v1 = vld [vmem:[%s2341_s6 + $0x28] sm:$0xf0]  ;;  %v1905_v2 = vld [vmem:[%s2341_s6 + $0xa4] sm:$0xf]  ;;  %v1738_v4 = vor.u32 %v1890_v60, %v1737_v59 }
  0x41   : > { %907 = vmatpush.bf16.msra.mxu1 %v1818_v45  ;;  %v1803_v3 = vld [vmem:[%s2341_s6 + $0xa8] sm:$0xf0]  ;;  %v1802_v5 = vor.u32 %v1906_v63, %v1801_v61  ;;  %v1742_v6 = vor.u32 %v1889_v0, %v1739_v1  ;;  %v1729_v7 = vld [vmem:[%s2341_s6 + $0x10] sm:$0xf]  ;;  %v1888_v8 = vld [vmem:[%s2341_s6 + $0x14] sm:$0xf0] }
  0x42   : > { %996 = vmatpush.bf16.msra.mxu2 %v1758_v46  ;;  %v1793_v9 = vld [vmem:[%s2341_s6 + $0x90] sm:$0xf]  ;;  %v1806_v10 = vor.u32 %v1905_v2, %v1803_v3  ;;  %v1904_v11 = vld [vmem:[%s2341_s6 + $0x94] sm:$0xf0]  ;;  %v1887_v12 = vld [vmem:[%s2341_s6 + $0x14] sm:$0xf]  ;;  %v1730_v16 = vor.u32 %v1888_v8, %v1729_v7 }
  0x43   : > { %1085 = vmatpush.bf16.msra.mxu3 %v1822_v50  ;;  %v1731_v13 = vld [vmem:[%s2341_s6 + $0x18] sm:$0xf0]  ;;  %v1903_v14 = vld [vmem:[%s2341_s6 + $0x94] sm:$0xf]  ;;  %v1794_v17 = vor.u32 %v1904_v11, %v1793_v9  ;;  %v1721_v19 = vld [vmem:[%s2341_s6] sm:$0xf] }
  0x44   : > { %819 = vmatpush.bf16.msra.mxu0 %v1746_v56  ;;  %v1795_v15 = vld [vmem:[%s2341_s6 + $0x98] sm:$0xf0]  ;;  %v1734_v18 = vor.u32 %v1887_v12, %v1731_v13  ;;  %v1886_v20 = vld [vmem:[%s2341_s6 + $0x4] sm:$0xf0]  ;;  %v1785_v21 = vld [vmem:[%s2341_s6 + $0x80] sm:$0xf] }
  0x45   : > { %908 = vmatpush.bf16.msra.mxu1 %v1810_v57  ;;  %v1798_v22 = vor.u32 %v1903_v14, %v1795_v15  ;;  %v1902_v23 = vld [vmem:[%s2341_s6 + $0x84] sm:$0xf0]  ;;  %v1885_v24 = vld [vmem:[%s2341_s6 + $0x4] sm:$0xf]  ;;  %v1723_v25 = vld [vmem:[%s2341_s6 + $0x8] sm:$0xf0]  ;;  %v1722_v28 = vor.u32 %v1886_v20, %v1721_v19 }
  0x46   : > { %997 = vmatpush.bf16.msra.mxu2 %v1750_v58  ;;  %v1901_v26 = vld [vmem:[%s2341_s6 + $0x84] sm:$0xf]  ;;  %v1787_v27 = vld [vmem:[%s2341_s6 + $0x88] sm:$0xf0]  ;;  %v1593_v29 = vld [vmem:[#allocation3] sm:$0xf]  ;;  %v1786_v31 = vor.u32 %v1902_v23, %v1785_v21  ;;  %v1726_v32 = vor.u32 %v1885_v24, %v1723_v25 }
  0x47   : > { %1086 = vmatpush.bf16.msra.mxu3 %v1814_v62  ;;  %v1854_v30 = vld [vmem:[#allocation3 + $0x4] sm:$0xf0]  ;;  %v1853_v33 = vld [vmem:[#allocation3 + $0x4] sm:$0xf]  ;;  %v1595_v34 = vld [vmem:[#allocation3 + $0x8] sm:$0xf0]  ;;  %v1790_v35 = vor.u32 %v1901_v26, %v1787_v27 }
  0x48   : > { %820 = vmatpush.bf16.msra.mxu0 %v1738_v4  ;;  %v1594_v36 = vor.u32 %v1854_v30, %v1593_v29  ;;  %v1598_v37 = vor.u32 %v1853_v33, %v1595_v34  ;;  %v1601_v38 = vld [vmem:[#allocation3 + $0x10] sm:$0xf]  ;;  %v1856_v39 = vld [vmem:[#allocation3 + $0x14] sm:$0xf0]  ;;  %v1855_v40 = vld [vmem:[#allocation3 + $0x14] sm:$0xf] }
  0x49   : > { %909 = vmatpush.bf16.msra.mxu1 %v1802_v5  ;;  %v1603_v41 = vld [vmem:[#allocation3 + $0x18] sm:$0xf0]  ;;  %v1602_v42 = vor.u32 %v1856_v39, %v1601_v38  ;;  %v1609_v44 = vld [vmem:[#allocation3 + $0x20] sm:$0xf]  ;;  %v1858_v45 = vld [vmem:[#allocation3 + $0x24] sm:$0xf0] }
  0x4a   : > { %998 = vmatpush.bf16.msra.mxu2 %v1742_v6  ;;  %v1606_v43 = vor.u32 %v1855_v40, %v1603_v41  ;;  %v1857_v46 = vld [vmem:[#allocation3 + $0x24] sm:$0xf]  ;;  %v1611_v47 = vld [vmem:[#allocation3 + $0x28] sm:$0xf0]  ;;  %v1610_v48 = vor.u32 %v1858_v45, %v1609_v44  ;;  %v1617_v50 = vld [vmem:[#allocation3 + $0x30] sm:$0xf] }
  0x4b   : > { %1087 = vmatpush.bf16.msra.mxu3 %v1806_v10  ;;  %v1614_v49 = vor.u32 %v1857_v46, %v1611_v47  ;;  %v1860_v51 = vld [vmem:[#allocation3 + $0x34] sm:$0xf0]  ;;  %v1859_v52 = vld [vmem:[#allocation3 + $0x34] sm:$0xf]  ;;  %v1619_v53 = vld [vmem:[#allocation3 + $0x38] sm:$0xf0] }
  0x4c   : > { %821 = vmatpush.bf16.msra.mxu0 %v1730_v16  ;;  %v1618_v54 = vor.u32 %v1860_v51, %v1617_v50  ;;  %v1622_v55 = vor.u32 %v1859_v52, %v1619_v53  ;;  %v1625_v56 = vld [vmem:[#allocation3 + $0x40] sm:$0xf]  ;;  %v1862_v57 = vld [vmem:[#allocation3 + $0x44] sm:$0xf0]  ;;  %v1861_v58 = vld [vmem:[#allocation3 + $0x44] sm:$0xf] }
  0x4d   : > { %910 = vmatpush.bf16.msra.mxu1 %v1794_v17  ;;  %v1627_v59 = vld [vmem:[#allocation3 + $0x48] sm:$0xf0]  ;;  %v1626_v60 = vor.u32 %v1862_v57, %v1625_v56  ;;  %v1633_v62 = vld [vmem:[#allocation3 + $0x50] sm:$0xf]  ;;  %v1864_v63 = vld [vmem:[#allocation3 + $0x54] sm:$0xf0] }
  0x4e   : > { %999 = vmatpush.bf16.msra.mxu2 %v1734_v18  ;;  %v1630_v61 = vor.u32 %v1861_v58, %v1627_v59  ;;  %v1863_v0 = vld [vmem:[#allocation3 + $0x54] sm:$0xf]  ;;  %v1635_v1 = vld [vmem:[#allocation3 + $0x58] sm:$0xf0]  ;;  %v1634_v2 = vor.u32 %v1864_v63, %v1633_v62  ;;  %v1641_v4 = vld [vmem:[#allocation3 + $0x60] sm:$0xf] }
  0x4f   : > { %1088 = vmatpush.bf16.msra.mxu3 %v1798_v22  ;;  %v1638_v3 = vor.u32 %v1863_v0, %v1635_v1  ;;  %v1866_v5 = vld [vmem:[#allocation3 + $0x64] sm:$0xf0]  ;;  %v1865_v6 = vld [vmem:[#allocation3 + $0x64] sm:$0xf]  ;;  %v1643_v7 = vld [vmem:[#allocation3 + $0x68] sm:$0xf0] }
  0x50   : > { %822 = vmatpush.bf16.msra.mxu0 %v1722_v28  ;;  %v1642_v8 = vor.u32 %v1866_v5, %v1641_v4  ;;  %v1646_v9 = vor.u32 %v1865_v6, %v1643_v7  ;;  %v1649_v10 = vld [vmem:[#allocation3 + $0x70] sm:$0xf]  ;;  %v1868_v11 = vld [vmem:[#allocation3 + $0x74] sm:$0xf0]  ;;  %v1867_v12 = vld [vmem:[#allocation3 + $0x74] sm:$0xf] }
  0x51   : > { %911 = vmatpush.bf16.msra.mxu1 %v1786_v31  ;;  %v1651_v13 = vld [vmem:[#allocation3 + $0x78] sm:$0xf0]  ;;  %v1650_v14 = vor.u32 %v1868_v11, %v1649_v10  ;;  %s254_s10 = scalar_lea.vmem [#allocation8], %s1589_s7  ;;  %v1657_v17 = vld [vmem:[#allocation3 + $0x80] sm:$0xf]  ;;  %s2420_s11 = scalar_lea.vmem [#allocation9], %s1588_s0 }
  0x52   : > { %1000 = vmatpush.bf16.msra.mxu2 %v1726_v32  ;;  %v1654_v15 = vor.u32 %v1867_v12, %v1651_v13  ;;  %v294_v16 = vld [vmem:[%s254_s10] sm:$0x3]  ;;  %v1870_v18 = vld [vmem:[#allocation3 + $0x84] sm:$0xf0]  ;;  %v1869_v20 = vld [vmem:[#allocation3 + $0x84] sm:$0xf] }
  0x53   : > { %1089 = vmatpush.bf16.msra.mxu3 %v1790_v35  ;;  %823 = vmatmul.bf16.vlgmr.msra.gmra.mxu0 %v1594_v36  ;;  %v295_v19 = vunpack.c.l.bf16 %v294_v16  ;;  %v1659_v21 = vld [vmem:[#allocation3 + $0x88] sm:$0xf0]  ;;  %v1658_v22 = vor.u32 %v1870_v18, %v1657_v17  ;;  %v1665_v38 = vld [vmem:[#allocation3 + $0x90] sm:$0xf]  ;;  %v1872_v39 = vld [vmem:[#allocation3 + $0x94] sm:$0xf0] }
  0x54   : > { %912 = vmatmul.bf16.vlgmr.msra.gmra.mxu1 %v1598_v37  ;;  %v1662_v24 = vor.u32 %v1869_v20, %v1659_v21  ;;  %v1871_v41 = vld [vmem:[#allocation3 + $0x94] sm:$0xf]  ;;  %v1666_v45 = vor.u32 %v1872_v39, %v1665_v38  ;;  %v1673_v62 = vld [vmem:[#allocation3 + $0xa0] sm:$0xf]  ;;  %v1874_v63 = vld [vmem:[#allocation3 + $0xa4] sm:$0xf0] }
  0x55   : > { %1001 = vmatmul.bf16.vlgmr.msra.gmra.mxu2 %v1594_v36  ;;  %v297_v25 = vperm.slane %v295_v19, 0  ;;  %v298_v27 = vperm.slane %v295_v19, 2  ;;  %v1873_v1 = vld [vmem:[#allocation3 + $0xa4] sm:$0xf]  ;;  %v1674_v5 = vor.u32 %v1874_v63, %v1673_v62  ;;  %s1917_s20 = sshll.u32 %s2170_s15, 3  ;;  %s1446_s30 = sshll.u32 %s2420_s11, 4  ;;  %s1447_s30 = int_to_ptr.vmem [resolvable:$true] %s1446_s30 }
  0x56   : > { %1090 = vmatmul.bf16.vlgmr.msra.gmra.mxu3 %v1598_v37  ;;  %s1445_s29 = scalar_lea.hbm %s2557_s3, %s1917_s20  ;;  %s1431_s15 = scalar_lea.sflag [#allocation5], %s2336_s9 }
  0x57   : > { %v2412_v28 = vperm.slane %v297_v25, 0  ;;  %v2414_v31 = vperm.slane %v298_v27, 0  ;;  %v1875_v25 = vld [vmem:[#allocation3 + $0xb4] sm:$0xf]  ;;  %s1448_s4 = sshll.u32 %s1445_s29, 4  ;;  %s2112_s26 = scalar_lea.hbm %s2557_s3, 768  ;;  %s1449_s4 = int_to_ptr.hbm [resolvable:$true] %s1448_s4 }
  0x58   : > { %s2106_s5 = sshra.s32 %s1449_s4, 4  ;;  %s2107_s5 = int_to_ptr.hbm [resolvable:$true] %s2106_s5 }
  0x59   : > { %s2108_s8 = scalar_lea.hbm %s2107_s5, 256  ;;  %p2113_p8 = scmp.lt.s32.totalorder %s2107_s5, %s2557_s3 }
  0x5a   : > { %p2109_p5 = scmp.ne.s32.totalorder %s2107_s5, %s2108_s8  ;;  %p2114_p9 = scmp.lt.s32.totalorder %s2112_s26, %s2108_s8 }
  0x5c   : > { %p2110_p6 = pnand %p2109_p5, %p2296_p13  ;;  %p2115_p10 = por %p2114_p9, %p2113_p8 }
  0x5e   : > { %p2111_p7 = pneg %p2110_p6 }
  0x60   : > { %p2116_p11 = pnand %p2115_p10, %p2111_p7 }
  0x63   : > { %828 = vmatmul.bf16.gmra.mxu0 %v1602_v42 }
  0x64   : > { %917 = vmatmul.bf16.gmra.mxu1 %v1606_v43 }
  0x65   : > { %1006 = vmatmul.bf16.gmra.mxu2 %v1602_v42  ;;  %v1667_v42 = vld [vmem:[#allocation3 + $0x98] sm:$0xf0] }
  0x66   : > { %1095 = vmatmul.bf16.gmra.mxu3 %v1606_v43 }
  0x73   : > { %833 = vmatmul.bf16.gmra.mxu0 %v1610_v48 }
  0x74   : > { %922 = vmatmul.bf16.gmra.mxu1 %v1614_v49 }
  0x75   : > { %1011 = vmatmul.bf16.gmra.mxu2 %v1610_v48  ;;  %v1670_v48 = vor.u32 %v1871_v41, %v1667_v42 }
  0x76   : > { %1100 = vmatmul.bf16.gmra.mxu3 %v1614_v49 }
  0x83   : > { %838 = vmatmul.bf16.gmra.mxu0 %v1618_v54 }
  0x84   : > { %927 = vmatmul.bf16.gmra.mxu1 %v1622_v55 }
  0x85   : > { %1016 = vmatmul.bf16.gmra.mxu2 %v1618_v54 }
  0x86   : > { %1105 = vmatmul.bf16.gmra.mxu3 %v1622_v55 }
  0x93   : > { %843 = vmatmul.bf16.gmra.mxu0 %v1626_v60 }
  0x94   : > { %932 = vmatmul.bf16.gmra.mxu1 %v1630_v61 }
  0x95   : > { %1021 = vmatmul.bf16.gmra.mxu2 %v1626_v60 }
  0x96   : > { %1110 = vmatmul.bf16.gmra.mxu3 %v1630_v61 }
  0xa3   : > { %848 = vmatmul.bf16.gmra.mxu0 %v1634_v2 }
  0xa4   : > { %937 = vmatmul.bf16.gmra.mxu1 %v1638_v3 }
  0xa5   : > { %1026 = vmatmul.bf16.gmra.mxu2 %v1634_v2  ;;  %v1675_v2 = vld [vmem:[#allocation3 + $0xa8] sm:$0xf0] }
  0xa6   : > { %1115 = vmatmul.bf16.gmra.mxu3 %v1638_v3 }
  0xb3   : > { %853 = vmatmul.bf16.gmra.mxu0 %v1642_v8 }
  0xb4   : > { %942 = vmatmul.bf16.gmra.mxu1 %v1646_v9 }
  0xb5   : > { %1031 = vmatmul.bf16.gmra.mxu2 %v1642_v8  ;;  %v1678_v8 = vor.u32 %v1873_v1, %v1675_v2 }
  0xb6   : > { %1120 = vmatmul.bf16.gmra.mxu3 %v1646_v9 }
  0xc3   : > { %858 = vmatmul.bf16.gmra.mxu0 %v1650_v14 }
  0xc4   : > { %947 = vmatmul.bf16.gmra.mxu1 %v1654_v15 }
  0xc5   : > { %1036 = vmatmul.bf16.gmra.mxu2 %v1650_v14 }
  0xc6   : > { %1125 = vmatmul.bf16.gmra.mxu3 %v1654_v15 }
  0xd0   : > { %v824_v23 = vpop.f32.mrf.mxu0 }
  0xd1   : > { %v913_v26 = vpop.f32.mrf.mxu1 }
  0xd2   : > { %v914_v29 = vadd.f32 %v913_v26, %v824_v23  ;;  %v1876_v23 = vld [vmem:[#allocation3 + $0xb4] sm:$0xf0]  ;;  %v1683_v26 = vld [vmem:[#allocation3 + $0xb8] sm:$0xf0] }
  0xd3   : > { %863 = vmatmul.bf16.gmra.mxu0 %v1658_v22 }
  0xd4   : > { %952 = vmatmul.bf16.gmra.mxu1 %v1662_v24  ;;  %v1171_v34 = vadd.f32 %v914_v29, %v2412_v28 }
  0xd5   : > { %1041 = vmatmul.bf16.gmra.mxu2 %v1658_v22  ;;  %v1681_v22 = vld [vmem:[#allocation3 + $0xb0] sm:$0xf] }
  0xd6   : > { %1130 = vmatmul.bf16.gmra.mxu3 %v1662_v24 }
  0xd8   : > { %v1002_v30 = vpop.f32.mrf.mxu2  ;;  %v826_v33 = vpop.f32.mrf.mxu0 }
  0xd9   : > { %v1091_v32 = vpop.f32.mrf.mxu3  ;;  %v915_v36 = vpop.f32.mrf.mxu1 }
  0xda   : > { %v1092_v35 = vadd.f32 %v1091_v32, %v1002_v30  ;;  %v916_v43 = vadd.f32 %v915_v36, %v826_v33  ;;  %v1682_v30 = vor.u32 %v1876_v23, %v1681_v22 }
  0xdc   : > { %v1172_v37 = vadd.f32 %v1092_v35, %v2414_v31  ;;  %v1173_v51 = vadd.f32 %v916_v43, %v2412_v28 }
  0xde   : > { %v1366_v40 = vpack.c.bf16 %v1172_v37, %v1171_v34  ;;  %v1686_v34 = vor.u32 %v1875_v25, %v1683_v26 }
  0xe0   : > { %1398 = vst [vmem:[%s2420_s11] sm:$0xff] %v1366_v40  ;;  %v1004_v44 = vpop.f32.mrf.mxu2  ;;  %v829_v47 = vpop.f32.mrf.mxu0 }
  0xe1   : > { %v1093_v46 = vpop.f32.mrf.mxu3  ;;  %v918_v50 = vpop.f32.mrf.mxu1 }
  0xe2   : > { %v1094_v49 = vadd.f32 %v1093_v46, %v1004_v44  ;;  %v919_v54 = vadd.f32 %v918_v50, %v829_v47 }
  0xe3   : > { %868 = vmatmul.bf16.gmra.mxu0 %v1666_v45 }
  0xe4   : > { %v1174_v52 = vadd.f32 %v1094_v49, %v2414_v31  ;;  %957 = vmatmul.bf16.gmra.mxu1 %v1670_v48  ;;  %v1175_v58 = vadd.f32 %v919_v54, %v2412_v28  ;;  %v1878_v49 = vld [vmem:[#allocation3 + $0xc4] sm:$0xf0] }
  0xe5   : > { %1046 = vmatmul.bf16.gmra.mxu2 %v1666_v45 }
  0xe6   : > { %v1367_v53 = vpack.c.bf16 %v1174_v52, %v1173_v51  ;;  %1135 = vmatmul.bf16.gmra.mxu3 %v1670_v48  ;;  %v1689_v48 = vld [vmem:[#allocation3 + $0xc0] sm:$0xf]  ;;  %v1877_v51 = vld [vmem:[#allocation3 + $0xc4] sm:$0xf]  ;;  %v1691_v52 = vld [vmem:[#allocation3 + $0xc8] sm:$0xf0] }
  0xe8   : > { %1399 = vst [vmem:[%s2420_s11 + $0x8] sm:$0xff] %v1367_v53  ;;  %v1007_v55 = vpop.f32.mrf.mxu2  ;;  %v831_v57 = vpop.f32.mrf.mxu0 }
  0xe9   : > { %v1096_v56 = vpop.f32.mrf.mxu3  ;;  %v920_v60 = vpop.f32.mrf.mxu1 }
  0xea   : > { %v1097_v59 = vadd.f32 %v1096_v56, %v1007_v55  ;;  %v921_v3 = vadd.f32 %v920_v60, %v831_v57  ;;  %v1690_v55 = vor.u32 %v1878_v49, %v1689_v48 }
  0xec   : > { %v1176_v61 = vadd.f32 %v1097_v59, %v2414_v31  ;;  %v1177_v11 = vadd.f32 %v921_v3, %v2412_v28 }
  0xee   : > { %v1368_v0 = vpack.c.bf16 %v1176_v61, %v1175_v58  ;;  %v1694_v58 = vor.u32 %v1877_v51, %v1691_v52 }
  0xf0   : > { %1400 = vst [vmem:[%s2420_s11 + $0x10] sm:$0xff] %v1368_v0  ;;  %v1009_v4 = vpop.f32.mrf.mxu2  ;;  %v834_v7 = vpop.f32.mrf.mxu0 }
  0xf1   : > { %v1098_v6 = vpop.f32.mrf.mxu3  ;;  %v923_v10 = vpop.f32.mrf.mxu1 }
  0xf2   : > { %v1099_v9 = vadd.f32 %v1098_v6, %v1009_v4  ;;  %v924_v14 = vadd.f32 %v923_v10, %v834_v7 }
  0xf3   : > { %873 = vmatmul.bf16.gmra.mxu0 %v1674_v5 }
  0xf4   : > { %v1178_v12 = vadd.f32 %v1099_v9, %v2414_v31  ;;  %962 = vmatmul.bf16.gmra.mxu1 %v1678_v8  ;;  %v1179_v18 = vadd.f32 %v924_v14, %v2412_v28  ;;  %v1880_v9 = vld [vmem:[#allocation3 + $0xd4] sm:$0xf0] }
  0xf5   : > { %1051 = vmatmul.bf16.gmra.mxu2 %v1674_v5 }
  0xf6   : > { %v1369_v13 = vpack.c.bf16 %v1178_v12, %v1177_v11  ;;  %1140 = vmatmul.bf16.gmra.mxu3 %v1678_v8  ;;  %v1697_v8 = vld [vmem:[#allocation3 + $0xd0] sm:$0xf]  ;;  %v1879_v11 = vld [vmem:[#allocation3 + $0xd4] sm:$0xf]  ;;  %v1699_v12 = vld [vmem:[#allocation3 + $0xd8] sm:$0xf0] }
  0xf8   : > { %1401 = vst [vmem:[%s2420_s11 + $0x18] sm:$0xff] %v1369_v13  ;;  %v1012_v15 = vpop.f32.mrf.mxu2  ;;  %v836_v17 = vpop.f32.mrf.mxu0 }
  0xf9   : > { %v1101_v16 = vpop.f32.mrf.mxu3  ;;  %v925_v20 = vpop.f32.mrf.mxu1 }
  0xfa   : > { %v1102_v19 = vadd.f32 %v1101_v16, %v1012_v15  ;;  %v926_v27 = vadd.f32 %v925_v20, %v836_v17  ;;  %v1698_v15 = vor.u32 %v1880_v9, %v1697_v8 }
  0xfc   : > { %v1180_v21 = vadd.f32 %v1102_v19, %v2414_v31  ;;  %v1181_v37 = vadd.f32 %v926_v27, %v2412_v28 }
  0xfe   : > { %v1370_v24 = vpack.c.bf16 %v1180_v21, %v1179_v18  ;;  %v1702_v18 = vor.u32 %v1879_v11, %v1699_v12 }
 0x100   : > { %1402 = vst [vmem:[%s2420_s11 + $0x20] sm:$0xff] %v1370_v24  ;;  %v1014_v29 = vpop.f32.mrf.mxu2  ;;  %v839_v33 = vpop.f32.mrf.mxu0 }
 0x101   : > { %v1103_v32 = vpop.f32.mrf.mxu3  ;;  %v928_v36 = vpop.f32.mrf.mxu1 }
 0x102   : > { %v1104_v35 = vadd.f32 %v1103_v32, %v1014_v29  ;;  %v929_v40 = vadd.f32 %v928_v36, %v839_v33 }
 0x103   : > { %878 = vmatmul.bf16.gmra.mxu0 %v1682_v30 }
 0x104   : > { %v1182_v38 = vadd.f32 %v1104_v35, %v2414_v31  ;;  %967 = vmatmul.bf16.gmra.mxu1 %v1686_v34  ;;  %v1183_v44 = vadd.f32 %v929_v40, %v2412_v28  ;;  %v1882_v35 = vld [vmem:[#allocation3 + $0xe4] sm:$0xf0] }
 0x105   : > { %1056 = vmatmul.bf16.gmra.mxu2 %v1682_v30 }
 0x106   : > { %v1371_v39 = vpack.c.bf16 %v1182_v38, %v1181_v37  ;;  %1145 = vmatmul.bf16.gmra.mxu3 %v1686_v34  ;;  %v1705_v34 = vld [vmem:[#allocation3 + $0xe0] sm:$0xf]  ;;  %v1881_v37 = vld [vmem:[#allocation3 + $0xe4] sm:$0xf]  ;;  %v1707_v38 = vld [vmem:[#allocation3 + $0xe8] sm:$0xf0] }
 0x108   : > { %1403 = vst [vmem:[%s2420_s11 + $0x28] sm:$0xff] %v1371_v39  ;;  %v1017_v41 = vpop.f32.mrf.mxu2  ;;  %v841_v43 = vpop.f32.mrf.mxu0 }
 0x109   : > { %v1106_v42 = vpop.f32.mrf.mxu3  ;;  %v930_v46 = vpop.f32.mrf.mxu1 }
 0x10a   : > { %v1107_v45 = vadd.f32 %v1106_v42, %v1017_v41  ;;  %v931_v53 = vadd.f32 %v930_v46, %v841_v43  ;;  %v1706_v41 = vor.u32 %v1882_v35, %v1705_v34 }
 0x10c   : > { %v1184_v47 = vadd.f32 %v1107_v45, %v2414_v31  ;;  %v1185_v61 = vadd.f32 %v931_v53, %v2412_v28 }
 0x10e   : > { %v1372_v50 = vpack.c.bf16 %v1184_v47, %v1183_v44  ;;  %v1710_v44 = vor.u32 %v1881_v37, %v1707_v38 }
 0x110   : > { %1404 = vst [vmem:[%s2420_s11 + $0x30] sm:$0xff] %v1372_v50  ;;  %v1019_v54 = vpop.f32.mrf.mxu2  ;;  %v844_v57 = vpop.f32.mrf.mxu0 }
 0x111   : > { %v1108_v56 = vpop.f32.mrf.mxu3  ;;  %v933_v60 = vpop.f32.mrf.mxu1 }
 0x112   : > { %v1109_v59 = vadd.f32 %v1108_v56, %v1019_v54  ;;  %v934_v0 = vadd.f32 %v933_v60, %v844_v57 }
 0x113   : > { %883 = vmatmul.bf16.gmra.mxu0 %v1690_v55 }
 0x114   : > { %v1186_v62 = vadd.f32 %v1109_v59, %v2414_v31  ;;  %972 = vmatmul.bf16.gmra.mxu1 %v1694_v58  ;;  %v1187_v4 = vadd.f32 %v934_v0, %v2412_v28  ;;  %v1884_v59 = vld [vmem:[#allocation3 + $0xf4] sm:$0xf0] }
 0x115   : > { %1061 = vmatmul.bf16.gmra.mxu2 %v1690_v55 }
 0x116   : > { %v1373_v63 = vpack.c.bf16 %v1186_v62, %v1185_v61  ;;  %1150 = vmatmul.bf16.gmra.mxu3 %v1694_v58  ;;  %v1713_v58 = vld [vmem:[#allocation3 + $0xf0] sm:$0xf]  ;;  %v1883_v61 = vld [vmem:[#allocation3 + $0xf4] sm:$0xf]  ;;  %v1715_v62 = vld [vmem:[#allocation3 + $0xf8] sm:$0xf0] }
 0x118   : > { %1405 = vst [vmem:[%s2420_s11 + $0x38] sm:$0xff] %v1373_v63  ;;  %v1022_v1 = vpop.f32.mrf.mxu2  ;;  %v846_v3 = vpop.f32.mrf.mxu0 }
 0x119   : > { %v1111_v2 = vpop.f32.mrf.mxu3  ;;  %v935_v6 = vpop.f32.mrf.mxu1 }
 0x11a   : > { %v1112_v5 = vadd.f32 %v1111_v2, %v1022_v1  ;;  %v936_v13 = vadd.f32 %v935_v6, %v846_v3  ;;  %v1714_v1 = vor.u32 %v1884_v59, %v1713_v58 }
 0x11c   : > { %v1188_v7 = vadd.f32 %v1112_v5, %v2414_v31  ;;  %v1189_v21 = vadd.f32 %v936_v13, %v2412_v28 }
 0x11e   : > { %v1374_v10 = vpack.c.bf16 %v1188_v7, %v1187_v4  ;;  %v1718_v4 = vor.u32 %v1883_v61, %v1715_v62 }
 0x120   : > { %1406 = vst [vmem:[%s2420_s11 + $0x40] sm:$0xff] %v1374_v10  ;;  %v1024_v14 = vpop.f32.mrf.mxu2  ;;  %v849_v17 = vpop.f32.mrf.mxu0 }
 0x121   : > { %v1113_v16 = vpop.f32.mrf.mxu3  ;;  %v938_v20 = vpop.f32.mrf.mxu1 }
 0x122   : > { %v1114_v19 = vadd.f32 %v1113_v16, %v1024_v14  ;;  %v939_v24 = vadd.f32 %v938_v20, %v849_v17 }
 0x123   : > { %888 = vmatmul.bf16.gmra.mxu0 %v1698_v15 }
 0x124   : > { %v1190_v22 = vadd.f32 %v1114_v19, %v2414_v31  ;;  %977 = vmatmul.bf16.gmra.mxu1 %v1702_v18  ;;  %v1191_v29 = vadd.f32 %v939_v24, %v2412_v28 }
 0x125   : > { %1066 = vmatmul.bf16.gmra.mxu2 %v1698_v15 }
 0x126   : > { %v1375_v23 = vpack.c.bf16 %v1190_v22, %v1189_v21  ;;  %1155 = vmatmul.bf16.gmra.mxu3 %v1702_v18 }
 0x128   : > { %1407 = vst [vmem:[%s2420_s11 + $0x48] sm:$0xff] %v1375_v23  ;;  %v1027_v25 = vpop.f32.mrf.mxu2  ;;  %v851_v27 = vpop.f32.mrf.mxu0 }
 0x129   : > { %v1116_v26 = vpop.f32.mrf.mxu3  ;;  %v940_v32 = vpop.f32.mrf.mxu1 }
 0x12a   : > { %v1117_v30 = vadd.f32 %v1116_v26, %v1027_v25  ;;  %v941_v39 = vadd.f32 %v940_v32, %v851_v27 }
 0x12c   : > { %v1192_v33 = vadd.f32 %v1117_v30, %v2414_v31  ;;  %v1193_v47 = vadd.f32 %v941_v39, %v2412_v28 }
 0x12e   : > { %v1376_v36 = vpack.c.bf16 %v1192_v33, %v1191_v29 }
 0x130   : > { %1408 = vst [vmem:[%s2420_s11 + $0x50] sm:$0xff] %v1376_v36  ;;  %v1029_v40 = vpop.f32.mrf.mxu2  ;;  %v854_v43 = vpop.f32.mrf.mxu0 }
 0x131   : > { %v1118_v42 = vpop.f32.mrf.mxu3  ;;  %v943_v46 = vpop.f32.mrf.mxu1 }
 0x132   : > { %v1119_v45 = vadd.f32 %v1118_v42, %v1029_v40  ;;  %v944_v50 = vadd.f32 %v943_v46, %v854_v43 }
 0x133   : > { %893 = vmatmul.bf16.gmra.mxu0 %v1706_v41 }
 0x134   : > { %v1194_v48 = vadd.f32 %v1119_v45, %v2414_v31  ;;  %982 = vmatmul.bf16.gmra.mxu1 %v1710_v44  ;;  %v1195_v54 = vadd.f32 %v944_v50, %v2412_v28 }
 0x135   : > { %1071 = vmatmul.bf16.gmra.mxu2 %v1706_v41 }
 0x136   : > { %v1377_v49 = vpack.c.bf16 %v1194_v48, %v1193_v47  ;;  %1160 = vmatmul.bf16.gmra.mxu3 %v1710_v44 }
 0x138   : > { %1409 = vst [vmem:[%s2420_s11 + $0x58] sm:$0xff] %v1377_v49  ;;  %v1032_v51 = vpop.f32.mrf.mxu2  ;;  %v856_v53 = vpop.f32.mrf.mxu0 }
 0x139   : > { %v1121_v52 = vpop.f32.mrf.mxu3  ;;  %v945_v56 = vpop.f32.mrf.mxu1 }
 0x13a   : > { %v1122_v55 = vadd.f32 %v1121_v52, %v1032_v51  ;;  %v946_v63 = vadd.f32 %v945_v56, %v856_v53 }
 0x13c   : > { %v1196_v57 = vadd.f32 %v1122_v55, %v2414_v31  ;;  %v1197_v7 = vadd.f32 %v946_v63, %v2412_v28 }
 0x13e   : > { %v1378_v60 = vpack.c.bf16 %v1196_v57, %v1195_v54 }
 0x140   : > { %1410 = vst [vmem:[%s2420_s11 + $0x60] sm:$0xff] %v1378_v60  ;;  %v1034_v0 = vpop.f32.mrf.mxu2  ;;  %v859_v3 = vpop.f32.mrf.mxu0 }
 0x141   : > { %v1123_v2 = vpop.f32.mrf.mxu3  ;;  %v948_v6 = vpop.f32.mrf.mxu1 }
 0x142   : > { %v1124_v5 = vadd.f32 %v1123_v2, %v1034_v0  ;;  %v949_v10 = vadd.f32 %v948_v6, %v859_v3 }
 0x143   : > { %898 = vmatmul.bf16.gmra.mxu0 %v1714_v1 }
 0x144   : > { %v1198_v8 = vadd.f32 %v1124_v5, %v2414_v31  ;;  %987 = vmatmul.bf16.gmra.mxu1 %v1718_v4  ;;  %v1199_v14 = vadd.f32 %v949_v10, %v2412_v28 }
 0x145   : > { %1076 = vmatmul.bf16.gmra.mxu2 %v1714_v1 }
 0x146   : > { %v1379_v9 = vpack.c.bf16 %v1198_v8, %v1197_v7  ;;  %1165 = vmatmul.bf16.gmra.mxu3 %v1718_v4 }
 0x148   : > { %1411 = vst [vmem:[%s2420_s11 + $0x68] sm:$0xff] %v1379_v9  ;;  %v1037_v11 = vpop.f32.mrf.mxu2  ;;  %v861_v13 = vpop.f32.mrf.mxu0 }
 0x149   : > { %v1126_v12 = vpop.f32.mrf.mxu3  ;;  %v950_v16 = vpop.f32.mrf.mxu1 }
 0x14a   : > { %v1127_v15 = vadd.f32 %v1126_v12, %v1037_v11  ;;  %v951_v19 = vadd.f32 %v950_v16, %v861_v13 }
 0x14c   : > { %v1200_v17 = vadd.f32 %v1127_v15, %v2414_v31  ;;  %v1201_v25 = vadd.f32 %v951_v19, %v2412_v28 }
 0x14e   : > { %v1380_v18 = vpack.c.bf16 %v1200_v17, %v1199_v14 }
 0x150   : > { %1412 = vst [vmem:[%s2420_s11 + $0x70] sm:$0xff] %v1380_v18  ;;  %v1039_v20 = vpop.f32.mrf.mxu2  ;;  %v864_v22 = vpop.f32.mrf.mxu0 }
 0x151   : > { %v1128_v21 = vpop.f32.mrf.mxu3  ;;  %v953_v24 = vpop.f32.mrf.mxu1 }
 0x152   : > { %v1129_v23 = vadd.f32 %v1128_v21, %v1039_v20  ;;  %v954_v29 = vadd.f32 %v953_v24, %v864_v22 }
 0x154   : > { %v1202_v26 = vadd.f32 %v1129_v23, %v2414_v31  ;;  %v1203_v34 = vadd.f32 %v954_v29, %v2412_v28 }
 0x156   : > { %v1381_v27 = vpack.c.bf16 %v1202_v26, %v1201_v25 }
 0x158   : > { %1413 = vst [vmem:[%s2420_s11 + $0x78] sm:$0xff] %v1381_v27  ;;  %v1042_v30 = vpop.f32.mrf.mxu2  ;;  %v866_v33 = vpop.f32.mrf.mxu0 }
 0x159   : > { %v1131_v32 = vpop.f32.mrf.mxu3  ;;  %v955_v36 = vpop.f32.mrf.mxu1 }
 0x15a   : > { %v1132_v35 = vadd.f32 %v1131_v32, %v1042_v30  ;;  %v956_v39 = vadd.f32 %v955_v36, %v866_v33 }
 0x15c   : > { %v1204_v37 = vadd.f32 %v1132_v35, %v2414_v31  ;;  %v1205_v45 = vadd.f32 %v956_v39, %v2412_v28 }
 0x15e   : > { %v1382_v38 = vpack.c.bf16 %v1204_v37, %v1203_v34 }
 0x160   : > { %1414 = vst [vmem:[%s2420_s11 + $0x80] sm:$0xff] %v1382_v38  ;;  %v1044_v40 = vpop.f32.mrf.mxu2  ;;  %v869_v42 = vpop.f32.mrf.mxu0 }
 0x161   : > { %v1133_v41 = vpop.f32.mrf.mxu3  ;;  %v958_v44 = vpop.f32.mrf.mxu1 }
 0x162   : > { %v1134_v43 = vadd.f32 %v1133_v41, %v1044_v40  ;;  %v959_v48 = vadd.f32 %v958_v44, %v869_v42 }
 0x164   : > { %v1206_v46 = vadd.f32 %v1134_v43, %v2414_v31  ;;  %v1207_v52 = vadd.f32 %v959_v48, %v2412_v28 }
 0x166   : > { %v1383_v47 = vpack.c.bf16 %v1206_v46, %v1205_v45 }
 0x168   : > { %1415 = vst [vmem:[%s2420_s11 + $0x88] sm:$0xff] %v1383_v47  ;;  %v1047_v49 = vpop.f32.mrf.mxu2  ;;  %v871_v51 = vpop.f32.mrf.mxu0 }
 0x169   : > { %v1136_v50 = vpop.f32.mrf.mxu3  ;;  %v960_v54 = vpop.f32.mrf.mxu1 }
 0x16a   : > { %v1137_v53 = vadd.f32 %v1136_v50, %v1047_v49  ;;  %v961_v57 = vadd.f32 %v960_v54, %v871_v51 }
 0x16c   : > { %v1208_v55 = vadd.f32 %v1137_v53, %v2414_v31  ;;  %v1209_v63 = vadd.f32 %v961_v57, %v2412_v28 }
 0x16e   : > { %v1384_v56 = vpack.c.bf16 %v1208_v55, %v1207_v52 }
 0x170   : > { %1416 = vst [vmem:[%s2420_s11 + $0x90] sm:$0xff] %v1384_v56  ;;  %v1049_v58 = vpop.f32.mrf.mxu2  ;;  %v874_v60 = vpop.f32.mrf.mxu0 }
 0x171   : > { %v1138_v59 = vpop.f32.mrf.mxu3  ;;  %v963_v62 = vpop.f32.mrf.mxu1 }
 0x172   : > { %v1139_v61 = vadd.f32 %v1138_v59, %v1049_v58  ;;  %v964_v2 = vadd.f32 %v963_v62, %v874_v60 }
 0x174   : > { %v1210_v0 = vadd.f32 %v1139_v61, %v2414_v31  ;;  %v1211_v6 = vadd.f32 %v964_v2, %v2412_v28 }
 0x176   : > { %v1385_v1 = vpack.c.bf16 %v1210_v0, %v1209_v63 }
 0x178   : > { %1417 = vst [vmem:[%s2420_s11 + $0x98] sm:$0xff] %v1385_v1  ;;  %v1052_v3 = vpop.f32.mrf.mxu2  ;;  %v876_v5 = vpop.f32.mrf.mxu0 }
 0x179   : > { %v1141_v4 = vpop.f32.mrf.mxu3  ;;  %v965_v8 = vpop.f32.mrf.mxu1 }
 0x17a   : > { %v1142_v7 = vadd.f32 %v1141_v4, %v1052_v3  ;;  %v966_v11 = vadd.f32 %v965_v8, %v876_v5 }
 0x17c   : > { %v1212_v9 = vadd.f32 %v1142_v7, %v2414_v31  ;;  %v1213_v17 = vadd.f32 %v966_v11, %v2412_v28 }
 0x17e   : > { %v1386_v10 = vpack.c.bf16 %v1212_v9, %v1211_v6 }
 0x180   : > { %1418 = vst [vmem:[%s2420_s11 + $0xa0] sm:$0xff] %v1386_v10  ;;  %v1054_v12 = vpop.f32.mrf.mxu2  ;;  %v879_v14 = vpop.f32.mrf.mxu0 }
 0x181   : > { %v1143_v13 = vpop.f32.mrf.mxu3  ;;  %v968_v16 = vpop.f32.mrf.mxu1 }
 0x182   : > { %v1144_v15 = vadd.f32 %v1143_v13, %v1054_v12  ;;  %v969_v20 = vadd.f32 %v968_v16, %v879_v14 }
 0x184   : > { %v1214_v18 = vadd.f32 %v1144_v15, %v2414_v31  ;;  %v1215_v24 = vadd.f32 %v969_v20, %v2412_v28 }
 0x186   : > { %v1387_v19 = vpack.c.bf16 %v1214_v18, %v1213_v17 }
 0x188   : > { %1419 = vst [vmem:[%s2420_s11 + $0xa8] sm:$0xff] %v1387_v19  ;;  %v1057_v21 = vpop.f32.mrf.mxu2  ;;  %v881_v23 = vpop.f32.mrf.mxu0 }
 0x189   : > { %v1146_v22 = vpop.f32.mrf.mxu3  ;;  %v970_v26 = vpop.f32.mrf.mxu1 }
 0x18a   : > { %v1147_v25 = vadd.f32 %v1146_v22, %v1057_v21  ;;  %v971_v30 = vadd.f32 %v970_v26, %v881_v23 }
 0x18c   : > { %v1216_v27 = vadd.f32 %v1147_v25, %v2414_v31  ;;  %v1217_v37 = vadd.f32 %v971_v30, %v2412_v28 }
 0x18e   : > { %v1388_v29 = vpack.c.bf16 %v1216_v27, %v1215_v24 }
 0x190   : > { %1420 = vst [vmem:[%s2420_s11 + $0xb0] sm:$0xff] %v1388_v29  ;;  %v1059_v32 = vpop.f32.mrf.mxu2  ;;  %v884_v34 = vpop.f32.mrf.mxu0 }
 0x191   : > { %v1148_v33 = vpop.f32.mrf.mxu3  ;;  %v973_v36 = vpop.f32.mrf.mxu1 }
 0x192   : > { %v1149_v35 = vadd.f32 %v1148_v33, %v1059_v32  ;;  %v974_v40 = vadd.f32 %v973_v36, %v884_v34 }
 0x194   : > { %v1218_v38 = vadd.f32 %v1149_v35, %v2414_v31  ;;  %v1219_v44 = vadd.f32 %v974_v40, %v2412_v28 }
 0x196   : > { %v1389_v39 = vpack.c.bf16 %v1218_v38, %v1217_v37 }
 0x198   : > { %1421 = vst [vmem:[%s2420_s11 + $0xb8] sm:$0xff] %v1389_v39  ;;  %v1062_v41 = vpop.f32.mrf.mxu2  ;;  %v886_v43 = vpop.f32.mrf.mxu0 }
 0x199   : > { %v1151_v42 = vpop.f32.mrf.mxu3  ;;  %v975_v46 = vpop.f32.mrf.mxu1 }
 0x19a   : > { %v1152_v45 = vadd.f32 %v1151_v42, %v1062_v41  ;;  %v976_v49 = vadd.f32 %v975_v46, %v886_v43 }
 0x19c   : > { %v1220_v47 = vadd.f32 %v1152_v45, %v2414_v31  ;;  %v1221_v55 = vadd.f32 %v976_v49, %v2412_v28 }
 0x19e   : > { %v1390_v48 = vpack.c.bf16 %v1220_v47, %v1219_v44 }
 0x1a0   : > { %1422 = vst [vmem:[%s2420_s11 + $0xc0] sm:$0xff] %v1390_v48  ;;  %v1064_v50 = vpop.f32.mrf.mxu2  ;;  %v889_v52 = vpop.f32.mrf.mxu0 }
 0x1a1   : > { %v1153_v51 = vpop.f32.mrf.mxu3  ;;  %v978_v54 = vpop.f32.mrf.mxu1 }
 0x1a2   : > { %v1154_v53 = vadd.f32 %v1153_v51, %v1064_v50  ;;  %v979_v58 = vadd.f32 %v978_v54, %v889_v52 }
 0x1a4   : > { %v1222_v56 = vadd.f32 %v1154_v53, %v2414_v31  ;;  %v1223_v62 = vadd.f32 %v979_v58, %v2412_v28 }
 0x1a6   : > { %v1391_v57 = vpack.c.bf16 %v1222_v56, %v1221_v55 }
 0x1a8   : > { %1423 = vst [vmem:[%s2420_s11 + $0xc8] sm:$0xff] %v1391_v57  ;;  %v1067_v59 = vpop.f32.mrf.mxu2  ;;  %v891_v61 = vpop.f32.mrf.mxu0 }
 0x1a9   : > { %v1156_v60 = vpop.f32.mrf.mxu3  ;;  %v980_v0 = vpop.f32.mrf.mxu1 }
 0x1aa   : > { %v1157_v63 = vadd.f32 %v1156_v60, %v1067_v59  ;;  %v981_v3 = vadd.f32 %v980_v0, %v891_v61 }
 0x1ac   : > { %v1224_v1 = vadd.f32 %v1157_v63, %v2414_v31  ;;  %v1225_v9 = vadd.f32 %v981_v3, %v2412_v28 }
 0x1ae   : > { %v1392_v2 = vpack.c.bf16 %v1224_v1, %v1223_v62 }
 0x1b0   : > { %1424 = vst [vmem:[%s2420_s11 + $0xd0] sm:$0xff] %v1392_v2  ;;  %v1069_v4 = vpop.f32.mrf.mxu2  ;;  %v894_v6 = vpop.f32.mrf.mxu0 }
 0x1b1   : > { %v1158_v5 = vpop.f32.mrf.mxu3  ;;  %v983_v8 = vpop.f32.mrf.mxu1 }
 0x1b2   : > { %v1159_v7 = vadd.f32 %v1158_v5, %v1069_v4  ;;  %v984_v12 = vadd.f32 %v983_v8, %v894_v6 }
 0x1b4   : > { %v1226_v10 = vadd.f32 %v1159_v7, %v2414_v31  ;;  %v1227_v16 = vadd.f32 %v984_v12, %v2412_v28 }
 0x1b6   : > { %v1393_v11 = vpack.c.bf16 %v1226_v10, %v1225_v9 }
 0x1b8   : > { %1425 = vst [vmem:[%s2420_s11 + $0xd8] sm:$0xff] %v1393_v11  ;;  %v1072_v13 = vpop.f32.mrf.mxu2  ;;  %v896_v15 = vpop.f32.mrf.mxu0 }
 0x1b9   : > { %v1161_v14 = vpop.f32.mrf.mxu3  ;;  %v985_v18 = vpop.f32.mrf.mxu1 }
 0x1ba   : > { %v1162_v17 = vadd.f32 %v1161_v14, %v1072_v13  ;;  %v986_v21 = vadd.f32 %v985_v18, %v896_v15 }
 0x1bc   : > { %v1228_v19 = vadd.f32 %v1162_v17, %v2414_v31  ;;  %v1229_v27 = vadd.f32 %v986_v21, %v2412_v28 }
 0x1be   : > { %v1394_v20 = vpack.c.bf16 %v1228_v19, %v1227_v16 }
 0x1c0   : > { %1426 = vst [vmem:[%s2420_s11 + $0xe0] sm:$0xff] %v1394_v20  ;;  %v1074_v22 = vpop.f32.mrf.mxu2  ;;  %v899_v25 = vpop.f32.mrf.mxu0 }
 0x1c1   : > { %v1163_v23 = vpop.f32.mrf.mxu3  ;;  %v988_v26 = vpop.f32.mrf.mxu1 }
 0x1c2   : > { %v1164_v24 = vadd.f32 %v1163_v23, %v1074_v22  ;;  %v989_v32 = vadd.f32 %v988_v26, %v899_v25 }
 0x1c4   : > { %v1230_v29 = vadd.f32 %v1164_v24, %v2414_v31  ;;  %v1231_v35 = vadd.f32 %v989_v32, %v2412_v28 }
 0x1c6   : > { %v1395_v30 = vpack.c.bf16 %v1230_v29, %v1229_v27 }
 0x1c8   : > { %1427 = vst [vmem:[%s2420_s11 + $0xe8] sm:$0xff] %v1395_v30  ;;  %v1077_v33 = vpop.f32.mrf.mxu2  ;;  %v901_v38 = vpop.f32.mrf.mxu0 }
 0x1c9   : > { %v1166_v34 = vpop.f32.mrf.mxu3  ;;  %v990_v39 = vpop.f32.mrf.mxu1 }
 0x1ca   : > { %v1167_v36 = vadd.f32 %v1166_v34, %v1077_v33  ;;  %v991_v41 = vadd.f32 %v990_v39, %v901_v38 }
 0x1cc   : > { %v1232_v37 = vadd.f32 %v1167_v36, %v2414_v31  ;;  %v1233_v45 = vadd.f32 %v991_v41, %v2412_v28 }
 0x1ce   : > { %v1396_v40 = vpack.c.bf16 %v1232_v37, %v1231_v35 }
 0x1d0   : > { %1428 = vst [vmem:[%s2420_s11 + $0xf0] sm:$0xff] %v1396_v40  ;;  %v1079_v42 = vpop.f32.mrf.mxu2 }
 0x1d1   : > { %v1168_v43 = vpop.f32.mrf.mxu3 }
 0x1d2   : > { %v1169_v44 = vadd.f32 %v1168_v43, %v1079_v42 }
 0x1d4   : > { %v1234_v46 = vadd.f32 %v1169_v44, %v2414_v31 }
 0x1d6   : > { %v1397_v47 = vpack.c.bf16 %v1234_v46, %v1233_v45 }
 0x1d8   : > { %1429 = vst [vmem:[%s2420_s11 + $0xf8] sm:$0xff] %v1397_v47 }
 0x1d9   : > { %2119 = shalt.err (!%p2116_p11)
}
 0x1da   : > { %s2184_s9 = smov 128   ;;  %s2185_s1 = smov 384  }
 0x1db   : > { %s2186_s6 = smov 8  }
 0x1dc   : > { %1926 = dma.vmem_to_hbm [thread:$0]  (%p2296_p13), %s1447_s30, 4096, %s1449_s4, %s1431_s15, %s2184_s9, %s2185_s1, %s2186_s6  }
 0x1dd PF: > { %p1946_p12 = scmp.ge.s32.totalorder %s2178_s17, 2  ;;  %s1463_s7 = sand.u32 1, %s2158_s12  }
 0x1de   : > { %s1464_s10 = scalar_lea.sflag [#allocation5], %s1463_s7 }
 0x1df   : > { %p1940_p2 = pnand %p1946_p12, %p2300_p0 }
 0x1e1   : > { %p1941_p3 = pneg %p1940_p2 }
 0x1e3   : > { %2153 = dma.done.wait (%p1941_p3), %s1464_s10, 4096  }
 0x1e4   : > { %2155 = vsyncadd (%p1941_p3), %s1464_s10, 4294963200  ;;  %s20_s17 = sadd.s32 1, %s2178_s17   ;;  %s2572_s12 = smov %s2162_s13 }
 0x1e5   : > { %p17_p1 = scmp.ge.s32.totalorder %s20_s17, 5   ;;  %s2573_s13 = smov %s2166_s14 }
 0x1e6   : > { %s2574_s14 = smov %s2257_s24  ;;  %s2575_s15 = smov %s2174_s16 }
 0x1e7   : > { %s2576_s16 = smov %s2578_s18  ;;  %19 = sbr.rel (!%p17_p1) target bundleno = 10 (0xa), region = 102 }
 0x1ec   :  { %1470 = vsyncpa [#allocation4], 1 }
 0x1ed   :  { %1472 = vsyncpa [#allocation4 + $0x1], 1 }
 0x1ee   :  { %1473 = vsyncpa [#allocation7], 1 }
 0x1ef   :  { %1475 = vsyncpa [#allocation7 + $0x1], 1 }
 0x1f0   :  { %1476 = vsyncpa [#allocation5], 1 }
 0x1f1   :  { %1478 = vsyncpa [#allocation5 + $0x1], 1 }

</bundles_post_ra>
